<compile_context>
chip_gen: v7x
topology: tpu7x:2x2x1
jax: 0.10.0
libtpu: 0.0.40
codegen_flags: <defaults>
</compile_context>

<pallas_src>
import functools

import jax
import jax.numpy as jnp
from jax.experimental import pallas as pl
from jax.experimental.pallas import tpu as pltpu


def _round_up(x, m):
    return (x + m - 1) // m * m


def sine_layer_kernel(x_ref, w_ref, b_ref, o_ref, *, omega_0):
    # MXU matmul with f32 accumulation, then f32 bias-add + sine (VPU/EUP).
    z = jnp.dot(x_ref[...], w_ref[...], preferred_element_type=jnp.float32)
    z = z + b_ref[...]                      # (1, tn) broadcast over (tm, tn)
    if omega_0 != 1.0:                      # static: folded-omega path skips the mul
        z = omega_0 * z
    o_ref[...] = jnp.sin(z).astype(o_ref.dtype)


def sine_layer(x, w_t, b, *, omega_0=30.0, tm_target=2048, tn_target=512,
               matmul_dtype=None, out_dtype=None):
    """SIREN sine layer: sin(omega_0 * (x @ w_t + b)).

    x:   (M, K) activations
    w_t: (K, N) weight (PyTorch weight is (N, K); pass it transposed)
    b:   (N,)  bias
    omega_0: SIREN frequency.  Pass 1.0 if omega was already folded into the
             parameters (init_sine_layer_params(..., fold_omega=True)).
    matmul_dtype: e.g. jnp.bfloat16 for ~2x MXU throughput / half the x & W
             HBM bytes (accumulation, bias-add and sin stay f32 in-kernel;
             ideally produce x in bf16 upstream so no extra cast pass runs).
    out_dtype: output dtype (default: x's original dtype).  Use bf16 when the
             next layer consumes bf16 to halve output HBM traffic.
    """
    M, K = x.shape
    K2, N = w_t.shape
    assert K == K2 and b.shape == (N,)
    out_dtype = out_dtype if out_dtype is not None else x.dtype

    if matmul_dtype is not None:
        x = x.astype(matmul_dtype)
        w_t = w_t.astype(matmul_dtype)

    # ---- layout plumbing: packed-sublane aligned, lane-dense, ragged-safe --
    in_bpe = jnp.dtype(x.dtype).itemsize
    out_bpe = jnp.dtype(out_dtype).itemsize
    sub_align = 8 * max(1, 4 // in_bpe)       # 8 rows for f32, 16 for bf16

    Kp = _round_up(K, sub_align)              # contraction dim (sublanes of x/W)
    Np = _round_up(N, 128)                    # lane-dense output columns

    # N tile: multiple of 128 that DIVIDES Np (no wasted over-padded column tile).
    tn = min(_round_up(tn_target, 128), Np)
    while Np % tn != 0:
        tn -= 128

    # M tile: as large as possible (amortize per-step overhead), aligned.
    tm = min(_round_up(tm_target, sub_align), _round_up(M, sub_align))

    # ---- per-generation VMEM budget (v7x: 64 MiB -> cap ~32 MiB) -----------
    try:
        vmem_cap = int(pltpu.get_tpu_info().vmem_capacity_bytes)
    except Exception:
        vmem_cap = 64 << 20                   # conservative fallback
    hard_cap = min(vmem_cap // 2, 48 << 20)

    def _need(tm_):
        # default double-buffering on every operand
        return 2 * (tm_ * Kp * in_bpe + Kp * tn * in_bpe + tn * 4
                    + tm_ * tn * out_bpe)

    # Shrink tm until the pipelined working set (plus headroom) fits.
    while int(_need(tm) * 1.5) + (4 << 20) > hard_cap and tm > sub_align:
        tm = max(_round_up(tm // 2, sub_align), sub_align)

    # Megacore (v7x): guarantee >= 2 steps on the parallel M axis for real work.
    if _round_up(M, tm) // tm == 1 and tm >= 512:
        tm = max(_round_up(tm // 2, sub_align), sub_align)
    Mp = _round_up(M, tm)

    vmem_limit = min(max(int(_need(tm) * 1.5) + (4 << 20), 16 << 20), hard_cap)

    xp = jnp.pad(x, ((0, Mp - M), (0, Kp - K)))
    wp = jnp.pad(w_t, ((0, Kp - K), (0, Np - N)))
    bp = jnp.pad(b.astype(jnp.float32), (0, Np - N)).reshape(1, Np)

    kernel = functools.partial(sine_layer_kernel, omega_0=float(omega_0))

    out_p = pl.pallas_call(
        kernel,
        out_shape=jax.ShapeDtypeStruct((Mp, Np), out_dtype),
        grid_spec=pltpu.PrefetchScalarGridSpec(
            num_scalar_prefetch=0,
            # M (i) outer, N (j) inner: the big x row-tile is constant across
            # the inner sweep (fetched once per i); cheap weight/bias tiles
            # re-stream along j with default double-buffering.
            grid=(Mp // tm, Np // tn),
            in_specs=[
                pl.BlockSpec((tm, Kp), lambda i, j: (i, 0)),   # x row tile (resident over j)
                pl.BlockSpec((Kp, tn), lambda i, j: (0, j)),   # weight column tile
                pl.BlockSpec((1, tn), lambda i, j: (0, j)),    # bias tile
            ],
            out_specs=pl.BlockSpec((tm, tn), lambda i, j: (i, j)),
        ),
        compiler_params=pltpu.CompilerParams(
            dimension_semantics=("parallel", "parallel"),
            vmem_limit_bytes=vmem_limit,
        ),
    )(xp, wp, bp)

    return out_p[:M, :N]


def init_sine_layer_params(key, in_features, out_features, *, is_first=False,
                           omega_0=30.0, fold_omega=False):
    """Deterministic SIREN init matching SineLayer.init_weights().

    fold_omega=True pre-multiplies W and b by omega_0 so the kernel epilogue
    is just sin(z); call sine_layer(..., omega_0=1.0) with such params.
    """
    kw, kb = jax.random.split(key)
    if is_first:
        bound_w = 1.0 / in_features
    else:
        bound_w = float(jnp.sqrt(6.0 / in_features)) / omega_0
    # PyTorch weight is (out, in); store transposed (in, out) for the kernel.
    w_t = jax.random.uniform(kw, (in_features, out_features), jnp.float32,
                             minval=-bound_w, maxval=bound_w)
    # nn.Linear default bias init: U(-1/sqrt(in), 1/sqrt(in))
    bound_b = 1.0 / float(jnp.sqrt(jnp.array(in_features, jnp.float32)))
    b = jax.random.uniform(kb, (out_features,), jnp.float32,
                           minval=-bound_b, maxval=bound_b)
    if fold_omega:
        w_t = w_t * omega_0
        b = b * omega_0
    return w_t, b


if __name__ == "__main__":
    key = jax.random.PRNGKey(0)
    k_x, k_p, k_x2, k_p2 = jax.random.split(key, 4)
    omega_0 = 30.0

    # Case 1: small hidden layer, aligned shapes, f32.
    batch, in_features, out_features = 16, 32, 32
    x = jax.random.normal(k_x, (batch, in_features), jnp.float32)
    w_t, b = init_sine_layer_params(k_p, in_features, out_features,
                                    is_first=True, omega_0=omega_0)
    y = jax.block_until_ready(sine_layer(x, w_t, b, omega_0=omega_0))
    y_ref = jnp.sin(omega_0 * (x @ w_t + b[None, :]))
    assert y.shape == (batch, out_features)
    assert jnp.allclose(y, y_ref, atol=1e-5, rtol=1e-5)

    # Case 2: ragged batch + SIREN-first-layer-like shapes (K=3) exercising
    # the padding / lane-dense output path.
    batch2, in2, out2 = 20, 3, 256
    x2 = jax.random.uniform(k_x2, (batch2, in2), jnp.float32, -1.0, 1.0)
    w2_t, b2 = init_sine_layer_params(k_p2, in2, out2, is_first=True,
                                      omega_0=omega_0)
    y2 = jax.block_until_ready(sine_layer(x2, w2_t, b2, omega_0=omega_0))
    y2_ref = jnp.sin(omega_0 * (x2 @ w2_t + b2[None, :]))
    assert y2.shape == (batch2, out2)
    assert jnp.allclose(y2, y2_ref, atol=1e-5, rtol=1e-5)

    # Case 3: omega folded into the parameters -> kernel skips the multiply.
    w3_t, b3 = init_sine_layer_params(k_p2, in2, out2, is_first=True,
                                      omega_0=omega_0, fold_omega=True)
    y3 = jax.block_until_ready(sine_layer(x2, w3_t, b3, omega_0=1.0))
    assert jnp.allclose(y3, y2_ref, atol=1e-5, rtol=1e-5)

    # Case 4: bf16 matmul + bf16 output fast path (compare against a reference
    # built from the *same* bf16-quantized inputs; loose tol for bf16 output).
    x2b = x2.astype(jnp.bfloat16)
    w2b = w2_t.astype(jnp.bfloat16)
    y4 = jax.block_until_ready(
        sine_layer(x2b, w2b, b2, omega_0=omega_0,
                   matmul_dtype=jnp.bfloat16, out_dtype=jnp.bfloat16))
    z_ref = x2b.astype(jnp.float32) @ w2b.astype(jnp.float32) + b2[None, :]
    y4_ref = jnp.sin(omega_0 * z_ref)
    assert y4.dtype == jnp.bfloat16
    assert jnp.allclose(y4.astype(jnp.float32), y4_ref, atol=2e-2, rtol=2e-2)

    print("KERNEL_OK")
</pallas_src>

<mosaic_0001>
module attributes {stable_mosaic.version = 11 : i64} {
  func.func @sine_layer_kernel(%arg0: i32, %arg1: i32, %arg2: memref<16x32xf32, #tpu.memory_space<vmem>>, %arg3: memref<32x128xf32, #tpu.memory_space<vmem>>, %arg4: memref<1x128xf32, #tpu.memory_space<vmem>>, %arg5: memref<16x128xf32, #tpu.memory_space<vmem>>) attributes {dimension_semantics = [#tpu.dimension_semantics<parallel>, #tpu.dimension_semantics<parallel>], iteration_bounds = array<i64: 1, 1>, scalar_prefetch = 0 : i64, scratch_operands = 0 : i64, tpu.core_type = #tpu.core_type<tc>, window_params = [{transform_indices = @transform_0, window_bounds = array<i64: 16, 32>}, {transform_indices = @transform_1, window_bounds = array<i64: 32, 128>}, {transform_indices = @transform_2, window_bounds = array<i64: 1, 128>}, {transform_indices = @transform_3, window_bounds = array<i64: 16, 128>}]} {
    %c0 = arith.constant 0 : index
    %c0_0 = arith.constant 0 : index
    %0 = vector.load %arg2[%c0, %c0_0] : memref<16x32xf32, #tpu.memory_space<vmem>>, vector<16x32xf32>
    %c0_1 = arith.constant 0 : index
    %c0_2 = arith.constant 0 : index
    %1 = vector.load %arg3[%c0_1, %c0_2] : memref<32x128xf32, #tpu.memory_space<vmem>>, vector<32x128xf32>
    %cst = arith.constant dense<0.000000e+00> : vector<16x128xf32>
    %2 = tpu.matmul %0, %1, %cst {dimension_numbers = #tpu.dot_dimension_numbers<[1], [0], [0], [1], [0, 0, 1, 1], [], []>} : vector<16x32xf32>, vector<32x128xf32>, vector<16x128xf32> -> vector<16x128xf32>
    %c0_3 = arith.constant 0 : index
    %c0_4 = arith.constant 0 : index
    %3 = vector.load %arg4[%c0_3, %c0_4] : memref<1x128xf32, #tpu.memory_space<vmem>>, vector<1x128xf32>
    %4 = vector.broadcast %3 : vector<1x128xf32> to vector<16x128xf32>
    %5 = arith.addf %2, %4 : vector<16x128xf32>
    %cst_5 = arith.constant 3.000000e+01 : f32
    %6 = vector.broadcast %cst_5 : f32 to vector<16x128xf32>
    %7 = arith.mulf %6, %5 : vector<16x128xf32>
    %8 = math.sin %7 : vector<16x128xf32>
    %c0_6 = arith.constant 0 : index
    %c0_7 = arith.constant 0 : index
    %9 = vector.load %arg5[%c0_6, %c0_7] : memref<16x128xf32, #tpu.memory_space<vmem>>, vector<16x128xf32>
    tpu.vector_store %arg5[%c0_6, %c0_7], %8 {strides = array<i32>} : memref<16x128xf32, #tpu.memory_space<vmem>>, vector<16x128xf32>,
    return
  }
  func.func @transform_0(%arg0: i32, %arg1: i32) -> (i32, i32) {
    %c0_i32 = arith.constant 0 : i32
    %c0_i32_0 = arith.constant 0 : i32
    return %arg0, %c0_i32 : i32, i32
  }
  func.func @transform_1(%arg0: i32, %arg1: i32) -> (i32, i32) {
    %c0_i32 = arith.constant 0 : i32
    %c0_i32_0 = arith.constant 0 : i32
    return %c0_i32, %arg1 : i32, i32
  }
  func.func @transform_2(%arg0: i32, %arg1: i32) -> (i32, i32) {
    %c0_i32 = arith.constant 0 : i32
    %c0_i32_0 = arith.constant 0 : i32
    return %c0_i32, %arg1 : i32, i32
  }
  func.func @transform_3(%arg0: i32, %arg1: i32) -> (i32, i32) {
    %c0_i32 = arith.constant 0 : i32
    return %arg0, %arg1 : i32, i32
  }
}

</mosaic_0001>

<bundles_post_ra>
// kernel: tpu_custom_call.1
= control target key start
LH: loop header
LB: loop body
LE: loop exit
PB: predicated region body
PF: predicated region fallthrough
CT: control target
= control target key end

     0   :  { %8 = vsyncpa [#allocation3], 0  ;;  %s644_s0 = inlined_call_operand.hbm [shape: f32[16,32], index: 0, kind: input, shape index: {}]   ;;  %s645_s1 = inlined_call_operand.hbm [shape: f32[32,128], index: 1, kind: input, shape index: {}]   ;;  %s646_s2 = inlined_call_operand.vmem [shape: f32[1,128], index: 2, kind: input, shape index: {}]   ;;  %s647_s3 = inlined_call_operand.hbm [shape: f32[16,128], index: 3, kind: output, shape index: {}]  }
   0x1   :  { %9 = vsyncpa [#allocation6], 0 }
   0x2   :  { %10 = vsyncpa [#allocation4], 0  ;;  %s503_s12 = smov [#allocation2]   ;;  %s431_s16 = scalar_lea.hbm %s644_s0, 256 }
   0x3   :  { %s16_s13 = sshll.u32 %s503_s12, 4  ;;  %p432_p0 = scmp.ne.s32.totalorder %s644_s0, %s431_s16  ;;  %s17_s13 = int_to_ptr.vmem [resolvable:$true] %s16_s13 }
   0x4   :  { %p435_p1 = scmp.lt.u32.totalorder %s431_s16, %s644_s0 }
   0x6   :  { %p437_p2 = pnand %p435_p1, %p432_p0 }
   0x8   :  { %440 = shalt.err (!%p437_p2)
}
   0x9   :  { %s441_s21 = scalar_lea.vmem %s17_s13, 256  ;;  %p446_p4 = scmp.lt.s32.totalorder %s17_s13, %s17_s13 }
   0xa   :  { %p442_p3 = scmp.ne.s32.totalorder %s17_s13, %s441_s21  ;;  %p447_p5 = scmp.lt.s32.totalorder %s441_s21, %s441_s21 }
   0xc   :  { %p448_p6 = por %p447_p5, %p446_p4 }
   0xe   :  { %p449_p7 = pnand %p448_p6, %p442_p3 }
  0x10   :  { %452 = shalt.err (!%p449_p7)
}
  0x11   :  { %s504_s22 = smov 128   ;;  %s505_s23 = smov 8  }
  0x12   :  { %22 = dma.hbm_to_vmem [thread:$0]  %s644_s0, 256, %s17_s13, [#allocation3], %s504_s22, %s504_s22, %s505_s23  }
  0x13   :  { %s506_s26 = smov [#allocation5]   ;;  %s453_s30 = scalar_lea.hbm %s645_s1, 512 }
  0x14   :  { %s28_s27 = sshll.u32 %s506_s26, 4  ;;  %p454_p8 = scmp.ne.s32.totalorder %s645_s1, %s453_s30  ;;  %s29_s27 = int_to_ptr.vmem [resolvable:$true] %s28_s27 }
  0x15   :  { %p457_p9 = scmp.lt.u32.totalorder %s453_s30, %s645_s1 }
  0x17   :  { %p459_p10 = pnand %p457_p9, %p454_p8 }
  0x19   :  { %462 = shalt.err (!%p459_p10)
}
  0x1a   :  { %s463_s8 = scalar_lea.vmem %s29_s27, 512  ;;  %p468_p12 = scmp.lt.s32.totalorder %s29_s27, %s29_s27 }
  0x1b   :  { %p464_p11 = scmp.ne.s32.totalorder %s29_s27, %s463_s8  ;;  %p469_p13 = scmp.lt.s32.totalorder %s463_s8, %s463_s8 }
  0x1d   :  { %p470_p0 = por %p469_p13, %p468_p12 }
  0x1f   :  { %p471_p1 = pnand %p470_p0, %p464_p11 }
  0x21   :  { %474 = shalt.err (!%p471_p1)
}
  0x22   :  { %34 = dma.hbm_to_vmem [thread:$0]  %s645_s1, 512, %s29_s27, [#allocation6], %s504_s22, %s504_s22, %s505_s23  }
  0x23   :  { %497 = dma.done.wait [#allocation3], 256  }
  0x24   :  { %498 = vsyncadd [#allocation3], 4294967040 }
  0x25   :  { %499 = dma.done.wait [#allocation6], 512  }
  0x26   :  { %500 = vsyncadd [#allocation6], 4294966784  ;;  %vm56_vm0 = vcmask 261120   ;;  %v45_v0 = vld [vmem:[#allocation5] sm:$0xff]  ;;  %v46_v1 = vld [vmem:[#allocation5 + $0x8] sm:$0xff] }
  0x27   :  { %v47_v2 = vld [vmem:[#allocation5 + $0x10] sm:$0xff]  ;;  %v396_v3 = vpack.c.bf16 %v46_v1, %v45_v0  ;;  %v48_v4 = vld [vmem:[#allocation5 + $0x18] sm:$0xff]  ;;  %v507_v35 = vmov 683565275   ;;  %v508_v39 = vmov 2475754826  }
  0x28   :  { %v43_v5 = vld [vmem:[#allocation2] sm:$0xff]  ;;  %v400_v6 = vpack.c.bf16 %v48_v4, %v47_v2  ;;  %v44_v7 = vld [vmem:[#allocation2 + $0x8] sm:$0xff]  ;;  %v509_v41 = vmov 2131351028   ;;  %v510_v43 = vmov 2102212464  }
  0x29   :  { %393 = vmatprep.mubr.msk.f32.mxu0 %vm56_vm0, %v43_v5  ;;  %397 = vmatprep.subr.bf16.mxu0 %v396_v3  ;;  %v368_v8 = vld [vmem:[%s646_s2] ss:$0 sm:$0xff]  ;;  %v511_v45 = vmov 920167782   ;;  %v512_v52 = vmov 1326507024  }
  0x2a   :  { %399 = vmatpush3.bf16.msra.mxu0 %v396_v3  ;;  %s513_s2 = smov [#allocation7]  }
  0x2b   :  { %401 = vmatprep.subr.bf16.mxu0 %v400_v6  ;;  %s355_s11 = sshll.u32 %s513_s2, 4  ;;  %s356_s11 = int_to_ptr.vmem [resolvable:$true] %s355_s11 }
  0x2c   :  { %s475_s12 = scalar_lea.vmem %s356_s11, 256  ;;  %p480_p3 = scmp.lt.s32.totalorder %s356_s11, %s356_s11 }
  0x2d   :  { %p476_p2 = scmp.ne.s32.totalorder %s356_s11, %s475_s12  ;;  %p481_p4 = scmp.lt.s32.totalorder %s475_s12, %s475_s12 }
  0x2e   :  { %403 = vmatpush3.bf16.msra.mxu0 %v400_v6 }
  0x2f   :  { %p482_p5 = por %p481_p4, %p480_p3 }
  0x31   :  { %394 = vmatmul.mubr.msk.f32.vlgmr.msra.gmra.mrb[0].mxu0 %vm56_vm0, %v44_v7  ;;  %p483_p6 = pnand %p482_p5, %p476_p2 }
 0x104   :  { %v395_v9 = vpop.f32.mrb[0].mxu0 }
 0x105   :  { %v135_v10 = vadd.f32 %v395_v9, %v368_v8  ;;  %v129_v11 = vpop.f32.mrb[1].mxu0 }
 0x106   :  { %v130_v12 = vadd.f32 %v368_v8, %v129_v11 }
 0x107   :  { %v567_v13 = vmul.f32 30.0, %v135_v10 }
 0x108   :  { %v569_v14 = vmul.f32 30.0, %v130_v12 }
 0x109   :  { %v244_v15 = vand.u32 2147483647, %v567_v13  ;;  %v247_v16 = vand.u32 2139095040, %v567_v13  ;;  %vm246_vm15 = vcmp.lt.s32.totalorder %v567_v13, 0 }
 0x10a   :  { %v143_v17 = vand.u32 2139095040, %v569_v14  ;;  %v140_v20 = vand.u32 2147483647, %v569_v14 }
 0x10b   :  { %v248_v18 = vshrl.u32 %v247_v16, 23  ;;  %v251_v19 = vand.u32 8388607, %v244_v15  ;;  %vm245_vm0 = vcmp.le.f32.partialorder %v244_v15, 0.7853982 }
 0x10c   :  { %v144_v21 = vshrl.u32 %v143_v17, 23  ;;  %v579_v26 = vand.u32 8388607, %v140_v20 }
 0x10d   :  { %v375_v22 = vadd.s32 4294967169, %v248_v18  ;;  %v252_v25 = vor.u32 8388608, %v251_v19 }
 0x10e   :  { %v371_v23 = vadd.s32 4294967169, %v144_v21  ;;  %v148_v33 = vor.u32 8388608, %v579_v26 }
 0x10f   :  { %v254_v24 = vadd.s32 1, %v375_v22  ;;  %v581_v32 = vshll.u32 %v252_v25, 8 }
 0x110   :  { %v150_v27 = vadd.s32 1, %v371_v23 }
 0x111   :  { %vm255_vm1 = vcmp.gt.s32.totalorder %v254_v24, 0 }
 0x112   :  { %v256_v28 = vsel %vm255_vm1, %v254_v24, 0  ;;  %vm151_vm2 = vcmp.gt.s32.totalorder %v150_v27, 0  ;;  %vm142_vm1 = vcmp.lt.s32.totalorder %v569_v14, 0 }
 0x113   :  { %v257_v29 = vshrl.u32 %v256_v28, 5  ;;  %v258_v30 = vand.u32 31, %v256_v28  ;;  %v152_v31 = vsel %vm151_vm2, %v150_v27, 0  ;;  %v188_v27 = vshll.u32 %v148_v33, 8 }
 0x114   :  { %v584_v37 = vshrl.u32 %v152_v31, 5  ;;  %v154_v38 = vand.u32 31, %v152_v31  ;;  %vm141_vm2 = vcmp.le.f32.partialorder %v140_v20, 0.7853982 }
 0x115   :  { %v259_v34 = vsub.s32 32, %v258_v30  ;;  %v261_v36 = vshll.u32 %v507_v35, %v258_v30  ;;  %v264_v40 = vshll.u32 %v508_v39, %v258_v30  ;;  %v267_v42 = vshll.u32 %v509_v41, %v258_v30 }
 0x116   :  { %v270_v44 = vshll.u32 %v510_v43, %v258_v30  ;;  %v273_v46 = vshll.u32 %v511_v45, %v258_v30  ;;  %vm276_vm3 = vcmp.lt.s32.totalorder %v257_v29, 1  ;;  %vm277_vm4 = vcmp.lt.s32.totalorder %v257_v29, 2 }
 0x117   :  { %v262_v47 = vshrl.u32 %v508_v39, %v259_v34  ;;  %v265_v48 = vshrl.u32 %v509_v41, %v259_v34  ;;  %v268_v49 = vshrl.u32 %v510_v43, %v259_v34  ;;  %v260_v50 = vshrl.u32 %v507_v35, %v259_v34 }
 0x118   :  { %v271_v51 = vshrl.u32 %v511_v45, %v259_v34  ;;  %v274_v53 = vshrl.u32 %v512_v52, %v259_v34  ;;  %v155_v57 = vsub.s32 32, %v154_v38  ;;  %vm278_vm5 = vcmp.lt.s32.totalorder %v257_v29, 3 }
 0x119   :  { %v263_v54 = vor.u32 %v262_v47, %v261_v36  ;;  %v266_v55 = vor.u32 %v265_v48, %v264_v40  ;;  %v269_v56 = vor.u32 %v268_v49, %v267_v42  ;;  %vm279_vm6 = vcmp.lt.s32.totalorder %v257_v29, 4 }
 0x11a   :  { %v272_v58 = vor.u32 %v271_v51, %v270_v44  ;;  %v275_v59 = vor.u32 %v274_v53, %v273_v46  ;;  %v157_v3 = vshll.u32 %v507_v35, %v154_v38  ;;  %v158_v6 = vshrl.u32 %v508_v39, %v155_v57 }
 0x11b   :  { %v280_v60 = vsel %vm276_vm3, %v260_v50, %v263_v54  ;;  %v281_v61 = vsel %vm279_vm6, %v269_v56, 2102212464  ;;  %v284_v62 = vsel %vm276_vm3, %v263_v54, %v266_v55  ;;  %v288_v63 = vsel %vm276_vm3, %v266_v55, %v269_v56 }
 0x11c   :  { %v282_v0 = vsel %vm278_vm5, %v266_v55, %v281_v61  ;;  %v285_v1 = vsel %vm279_vm6, %v272_v58, 920167782  ;;  %v289_v2 = vsel %vm279_vm6, %v275_v59, 1326507024  ;;  %v160_v7 = vshll.u32 %v508_v39, %v154_v38 }
 0x11d   :  { %v286_v4 = vsel %vm278_vm5, %v269_v56, %v285_v1  ;;  %v290_v5 = vsel %vm278_vm5, %v272_v58, %v289_v2  ;;  %v283_v8 = vsel %vm277_vm4, %v280_v60, %v282_v0  ;;  %v161_v11 = vshrl.u32 %v509_v41, %v155_v57 }
 0x11e   :  { %v287_v9 = vsel %vm277_vm4, %v284_v62, %v286_v4  ;;  %v291_v10 = vsel %vm277_vm4, %v288_v63, %v290_v5  ;;  %v159_v19 = vor.u32 %v158_v6, %v157_v3  ;;  %v163_v22 = vshll.u32 %v509_v41, %v154_v38 }
 0x11f   :  { %v593_v12 = vmul.u32.u64.low %v581_v32, %v291_v10  ;;  %v594_v16 = vmul.u32.u64.high %v581_v32, %v291_v10, %v593_v12  ;;  %v597_v17 = vmul.u32.u64.low %v581_v32, %v287_v9  ;;  %v598_v18 = vmul.u32.u64.high %v581_v32, %v287_v9, %v597_v17 }
 0x120   :  { %v162_v21 = vor.u32 %v161_v11, %v160_v7  ;;  %v164_v23 = vshrl.u32 %v510_v43, %v155_v57  ;;  %v166_v24 = vshll.u32 %v510_v43, %v154_v38  ;;  %v167_v25 = vshrl.u32 %v511_v45, %v155_v57 }
 0x121   :  { %v170_v26 = vshrl.u32 %v512_v52, %v155_v57  ;;  %v299_v28 = vmul.u32 %v581_v32, %v283_v8  ;;  %v156_v29 = vshrl.u32 %v507_v35, %v155_v57  ;;  %v169_v31 = vshll.u32 %v511_v45, %v154_v38 }
 0x122   :  { %v165_v30 = vor.u32 %v164_v23, %v163_v22  ;;  %vm301_vm7 = vc.u32 %v594_v16, %v597_v17  ;;  %v302_v34 = vadd.s32 1, %v598_v18  ;;  %v168_v36 = vor.u32 %v167_v25, %v166_v24 }
 0x123   :  { %vm172_vm8 = vcmp.lt.s32.totalorder %v584_v37, 1  ;;  %v171_v39 = vor.u32 %v170_v26, %v169_v31  ;;  %vm174_vm9 = vcmp.lt.s32.totalorder %v584_v37, 3  ;;  %vm175_vm10 = vcmp.lt.s32.totalorder %v584_v37, 4 }
 0x124   :  { %v180_v40 = vsel %vm172_vm8, %v159_v19, %v162_v21  ;;  %v303_v33 = vsel %vm301_vm7, %v302_v34, %v598_v18  ;;  %v177_v41 = vsel %vm175_vm10, %v165_v30, 2102212464  ;;  %v181_v32 = vsel %vm175_vm10, %v168_v36, 920167782 }
 0x125   :  { %v184_v35 = vsel %vm172_vm8, %v162_v21, %v165_v30  ;;  %v304_v42 = vadd.s32 %v303_v33, %v299_v28  ;;  %vm173_vm11 = vcmp.lt.s32.totalorder %v584_v37, 2  ;;  %v182_v38 = vsel %vm174_vm9, %v165_v30, %v181_v32 }
 0x126   :  { %v185_v43 = vsel %vm175_vm10, %v171_v39, 1326507024  ;;  %v176_v44 = vsel %vm172_vm8, %v156_v29, %v159_v19  ;;  %v178_v45 = vsel %vm174_vm9, %v162_v21, %v177_v41  ;;  %v183_v46 = vsel %vm173_vm11, %v180_v40, %v182_v38 }
 0x127   :  { %v186_v47 = vsel %vm174_vm9, %v168_v36, %v185_v43  ;;  %v305_v48 = vadd.s32 536870912, %v304_v42  ;;  %v608_v50 = vmul.u32.u64.low %v188_v27, %v183_v46  ;;  %v609_v51 = vmul.u32.u64.high %v188_v27, %v183_v46, %v608_v50 }
 0x128   :  { %v187_v49 = vsel %vm173_vm11, %v184_v35, %v186_v47  ;;  %v179_v55 = vsel %vm173_vm11, %v176_v44, %v178_v45  ;;  %v300_v7 = vadd.s32 %v597_v17, %v594_v16  ;;  %vm336_vm6 = vweird.f32 %v567_v13 }
 0x129   :  { %v611_v52 = vmul.u32.u64.low %v188_v27, %v187_v49  ;;  %v612_v53 = vmul.u32.u64.high %v188_v27, %v187_v49, %v611_v52  ;;  %v306_v54 = vshrl.u32 %v305_v48, 30  ;;  %v198_v57 = vadd.s32 1, %v609_v51 }
 0x12a   :  { %v195_v37 = vmul.u32 %v188_v27, %v179_v55  ;;  %vm232_vm10 = vweird.f32 %v569_v14 }
 0x12b   :  { %v307_v56 = vshll.u32 %v306_v54, 30  ;;  %vm197_vm12 = vc.u32 %v612_v53, %v608_v50  ;;  %v196_v28 = vadd.s32 %v608_v50, %v612_v53  ;;  %v330_v17 = vsub.s32 4, %v306_v54 }
 0x12c   :  { %v199_v59 = vsel %vm197_vm12, %v198_v57, %v609_v51 }
 0x12d   :  { %v308_v58 = vsub.s32 %v304_v42, %v307_v56  ;;  %v200_v60 = vadd.s32 %v199_v59, %v195_v37  ;;  %v331_v32 = vsel %vm246_vm15, %v330_v17, %v306_v54 }
 0x12e   :  { %v333_v44 = vsel %vm245_vm0, 0, %v331_v32 }
 0x12f   :  { %v310_v61 = vsub.s32 0, %v308_v58  ;;  %v201_v62 = vadd.s32 536870912, %v200_v60  ;;  %v337_v47 = vadd.s32 3, %v333_v44 }
 0x131   :  { %v376_v63 = vmin.u32 %v310_v61, %v308_v58  ;;  %v202_v0 = vshrl.u32 %v201_v62, 30  ;;  %v338_v51 = vand.u32 3, %v337_v47 }
 0x133   :  { %v312_v1 = vclz %v376_v63  ;;  %v203_v2 = vshll.u32 %v202_v0, 30  ;;  %v226_v46 = vsub.s32 4, %v202_v0  ;;  %vm343_vm3 = vcmp.eq.s32.totalorder %v338_v51, 2 }
 0x134   :  { %vm340_vm4 = vcmp.eq.s32.totalorder %v338_v51, 0  ;;  %vm339_vm5 = vcmp.lt.s32.totalorder %v338_v51, 2 }
 0x135   :  { %v377_v3 = vadd.s32 4294967294, %v312_v1  ;;  %v204_v4 = vsub.s32 %v200_v60, %v203_v2  ;;  %v227_v49 = vsel %vm142_vm1, %v226_v46, %v202_v0 }
 0x136   :  { %v229_v53 = vsel %vm141_vm2, 0, %v227_v49 }
 0x137   :  { %vm378_vm13 = vcmp.lt.s32.totalorder %v377_v3, 0  ;;  %v206_v6 = vsub.s32 0, %v204_v4  ;;  %v233_v57 = vadd.s32 3, %v229_v53 }
 0x138   :  { %v315_v5 = vsel %vm378_vm13, 0, %v377_v3 }
 0x139   :  { %v316_v8 = vsub.s32 32, %v315_v5  ;;  %v320_v9 = vsub.s32 4294967266, %v315_v5  ;;  %v372_v10 = vmin.u32 %v206_v6, %v204_v4  ;;  %v317_v11 = vshll.u32 %v308_v58, %v315_v5 }
 0x13a   :  { %v234_v60 = vand.u32 3, %v233_v57 }
 0x13b   :  { %v318_v12 = vshrl.u32 %v300_v7, %v316_v8  ;;  %v321_v18 = vadd.s32 127, %v320_v9  ;;  %v208_v19 = vclz %v372_v10 }
 0x13c   :  { %vm239_vm7 = vcmp.eq.s32.totalorder %v234_v60, 2  ;;  %vm236_vm8 = vcmp.eq.s32.totalorder %v234_v60, 0  ;;  %vm235_vm9 = vcmp.lt.s32.totalorder %v234_v60, 2 }
 0x13d   :  { %v319_v21 = vor.u32 %v318_v12, %v317_v11  ;;  %v322_v22 = vshll.u32 %v321_v18, 23  ;;  %v373_v23 = vadd.s32 4294967294, %v208_v19 }
 0x13f   :  { %v323_v24 = vor.u32 4788187, %v322_v22  ;;  %vm374_vm14 = vcmp.lt.s32.totalorder %v373_v23, 0  ;;  %v326_v26 = vcvt.s32.f32 %v319_v21 }
 0x140   :  { %v211_v27 = vsel %vm374_vm14, 0, %v373_v23 }
 0x141   :  { %v324_v25 = vand.u32 2147483647, %v323_v24  ;;  %v212_v29 = vsub.s32 32, %v211_v27  ;;  %v216_v30 = vsub.s32 4294967266, %v211_v27  ;;  %v213_v31 = vshll.u32 %v204_v4, %v211_v27 }
 0x143   :  { %v327_v16 = vmul.f32 %v326_v26, %v324_v25  ;;  %v214_v34 = vshrl.u32 %v196_v28, %v212_v29  ;;  %v217_v36 = vadd.s32 127, %v216_v30 }
 0x145   :  { %v328_v39 = vxor.u32 2147483648, %v327_v16  ;;  %v215_v40 = vor.u32 %v214_v34, %v213_v31  ;;  %v218_v33 = vshll.u32 %v217_v36, 23 }
 0x147   :  { %v329_v41 = vsel %vm246_vm15, %v328_v39, %v327_v16  ;;  %v219_v42 = vor.u32 4788187, %v218_v33  ;;  %v222_v43 = vcvt.s32.f32 %v215_v40 }
 0x148   :  { %v332_v35 = vsel %vm245_vm0, %v567_v13, %v329_v41 }
 0x149   :  { %423 = vcosq.f32 %v332_v35  ;;  %v220_v38 = vand.u32 2147483647, %v219_v42 }
 0x14a   :  { %425 = vsinq.f32 %v332_v35 }
 0x14b   :  { %v223_v45 = vmul.f32 %v222_v43, %v220_v38 }
 0x14d   :  { %v224_v48 = vxor.u32 2147483648, %v223_v45 }
 0x14f   :  { %v225_v15 = vsel %vm142_vm1, %v224_v48, %v223_v45 }
 0x150   :  { %v228_v50 = vsel %vm141_vm2, %v569_v14, %v225_v15 }
 0x151   :  { %427 = vcosq.f32 %v228_v50 }
 0x152   :  { %429 = vsinq.f32 %v228_v50 }
 0x153   :  { %v424_v52 = vpop.eup %423 }
 0x154   :  { %v426_v54 = vpop.eup %425  ;;  %v344_v55 = vxor.u32 2147483648, %v424_v52 }
 0x155   :  { %v341_v56 = vxor.u32 2147483648, %v426_v54 }
 0x156   :  { %v345_v37 = vsel %vm343_vm3, %v344_v55, %v426_v54 }
 0x157   :  { %v342_v58 = vsel %vm340_vm4, %v424_v52, %v341_v56 }
 0x158   :  { %v346_v20 = vsel %vm339_vm5, %v342_v58, %v345_v37 }
 0x159   :  { %v347_v59 = vsel %vm336_vm6, nan, %v346_v20 }
 0x15a   :  { %349 = vst [vmem:[#allocation7 + $0x8] sm:$0xff] %v347_v59 }
 0x15b   :  { %v428_v61 = vpop.eup %427 }
 0x15c   :  { %v430_v62 = vpop.eup %429  ;;  %v240_v63 = vxor.u32 2147483648, %v428_v61 }
 0x15d   :  { %v237_v0 = vxor.u32 2147483648, %v430_v62 }
 0x15e   :  { %v241_v1 = vsel %vm239_vm7, %v240_v63, %v430_v62 }
 0x15f   :  { %v238_v2 = vsel %vm236_vm8, %v428_v61, %v237_v0 }
 0x160   :  { %v242_v3 = vsel %vm235_vm9, %v238_v2, %v241_v1 }
 0x161   :  { %v243_v13 = vsel %vm232_vm10, nan, %v242_v3 }
 0x162   :  { %348 = vst [vmem:[#allocation7] sm:$0xff] %v243_v13 }
 0x163   :  { %486 = shalt.err (!%p483_p6)
}
 0x164   :  { %s487_s15 = scalar_lea.hbm %s647_s3, 256 }
 0x165   :  { %p488_p7 = scmp.ne.s32.totalorder %s647_s3, %s487_s15  ;;  %p491_p8 = scmp.lt.u32.totalorder %s487_s15, %s647_s3 }
 0x167   :  { %p493_p9 = pnand %p491_p8, %p488_p7 }
 0x169   :  { %496 = shalt.err (!%p493_p9)
}
 0x16a   :  { %361 = dma.vmem_to_hbm [thread:$0]  %s356_s11, 256, %s647_s3, [#allocation4], %s504_s22, %s504_s22, %s505_s23  }
 0x16b   :  { %501 = dma.done.wait [#allocation4], 256  }
 0x16c   :  { %502 = vsyncadd [#allocation4], 4294967040 }
 0x16d   :  { %365 = vsyncpa [#allocation3], 1 }
 0x16e   :  { %366 = vsyncpa [#allocation6], 1 }
 0x16f   :  { %367 = vsyncpa [#allocation4], 1 }

</bundles_post_ra>
